<compile_context>
chip_gen: v7x
topology: tpu7x:2x2x1
jax: 0.10.0
libtpu: 0.0.40
codegen_flags: <defaults>
</compile_context>

<pallas_src>
import functools

import jax
import jax.numpy as jnp
from jax import lax
from jax.experimental import pallas as pl
from jax.experimental.pallas import tpu as pltpu

_VMEM_LIMIT = 32 * 1024 * 1024  # safe on v5e/v6e (128 MiB) and v7x (64 MiB) physical VMEM


def _round_up(x, m):
    return ((x + m - 1) // m) * m


# ----------------------------- Pallas kernels -----------------------------

def _matmul_bias_act_kernel(*refs, activation, has_residual):
    """o = act(x @ w + b) [+ residual]; bf16 inputs, f32 accumulation on the MXU."""
    if has_residual:
        x_ref, w_ref, b_ref, r_ref, o_ref = refs
    else:
        x_ref, w_ref, b_ref, o_ref = refs
        r_ref = None
    acc = jnp.dot(x_ref[...], w_ref[...], preferred_element_type=jnp.float32)
    y = acc + b_ref[...]
    if activation == "relu6":
        y = jnp.clip(y, 0.0, 6.0)
    if r_ref is not None:
        y = y + r_ref[...].astype(jnp.float32)
    o_ref[...] = y.astype(o_ref.dtype)


def pallas_matmul_bias_act(x, w, bias, *, activation="none", residual=None,
                           out_dtype=jnp.bfloat16):
    """Row-tiled fused matmul + folded-BN bias + activation [+ fused residual add].

    x: (M, K); w: (K, Np) bf16 with the BN scale already folded in, Np % 128 == 0;
    bias: (1, Np) f32.  Returns a (Mp, Np) padded slab; caller slices [:M, :N].
    """
    M, K = x.shape
    K2, Np = w.shape
    assert K == K2 and Np % 128 == 0

    tm = 256 if M >= 256 else _round_up(M, 8)
    mp = _round_up(M, tm)

    x = x.astype(jnp.bfloat16)
    if mp != M:
        x = jnp.pad(x, ((0, mp - M), (0, 0)))

    in_specs = [
        pl.BlockSpec((tm, K), lambda i: (i, 0)),   # pipelined row tile
        pl.BlockSpec((K, Np), lambda i: (0, 0)),   # grid-invariant resident weights
        pl.BlockSpec((1, Np), lambda i: (0, 0)),   # folded-BN bias
    ]
    args = [x, w, bias]
    if residual is not None:
        r = residual.astype(jnp.bfloat16)
        if r.shape[1] != Np:
            r = jnp.pad(r, ((0, 0), (0, Np - r.shape[1])))
        if mp != M:
            r = jnp.pad(r, ((0, mp - M), (0, 0)))
        in_specs.append(pl.BlockSpec((tm, Np), lambda i: (i, 0)))
        args.append(r)

    kernel = functools.partial(_matmul_bias_act_kernel, activation=activation,
                               has_residual=residual is not None)
    return pl.pallas_call(
        kernel,
        out_shape=jax.ShapeDtypeStruct((mp, Np), out_dtype),
        grid=(mp // tm,),
        in_specs=in_specs,
        out_specs=pl.BlockSpec((tm, Np), lambda i: (i, 0)),
        compiler_params=pltpu.CompilerParams(
            dimension_semantics=("parallel",),
            vmem_limit_bytes=_VMEM_LIMIT),
    )(*args)


def _dw3x3_kernel(x_ref, w_ref, b_ref, o_ref, *, Ho, Wo):
    """3x3 stride-1 depthwise conv + folded-BN + ReLU6 for one padded image.

    x_ref: (Hp, Wp, C) bf16 (zero-padded); w_ref: (9, 1, C) bf16 (scale folded);
    b_ref: (1, C) f32; o_ref: (Ho, Wo, C) bf16.
    The 9 shifted taps are formed in-kernel — no (9, M, C) im2col materialization.
    """
    acc = None
    for ki in range(3):
        for kj in range(3):
            tap = x_ref[pl.ds(ki, Ho), pl.ds(kj, Wo), :].astype(jnp.float32)
            term = tap * w_ref[3 * ki + kj].astype(jnp.float32)
            acc = term if acc is None else acc + term
    y = jnp.clip(acc + b_ref[...].astype(jnp.float32), 0.0, 6.0)
    o_ref[...] = y.astype(o_ref.dtype)


def _pool_linear_kernel(x_ref, w_ref, b_ref, o_ref):
    """Global average pool over the spatial axis fused with the final Linear."""
    pooled = jnp.mean(x_ref[...].astype(jnp.float32), axis=1)            # (B, C)
    acc = jnp.dot(pooled.astype(jnp.bfloat16), w_ref[...],
                  preferred_element_type=jnp.float32)
    o_ref[...] = acc + b_ref[...]


# ----------------------------- Layer wrappers -----------------------------

def _im2col_3x3_s2(x):
    """x: (B,H,W,C) -> (B*Ho*Wo, 9*C) for the 3x3 stride-2 pad-1 stem conv."""
    B, H, W, C = x.shape
    xp = jnp.pad(x, ((0, 0), (1, 1), (1, 1), (0, 0)))
    Ho = (H - 1) // 2 + 1
    Wo = (W - 1) // 2 + 1
    cols = []
    for ki in range(3):
        for kj in range(3):
            t = lax.slice(xp, (0, ki, kj, 0),
                          (B, ki + 2 * (Ho - 1) + 1, kj + 2 * (Wo - 1) + 1, C),
                          (1, 2, 2, 1))
            cols.append(t.reshape(B * Ho * Wo, C))
    return jnp.concatenate(cols, axis=1), Ho, Wo


def stem_conv(x, layer):
    """3x3 s2 conv (im2col, K padded 27->32) + folded BN + ReLU6."""
    B = x.shape[0]
    cols, Ho, Wo = _im2col_3x3_s2(x)
    K = cols.shape[1]
    Kp = layer["w"].shape[0]
    if Kp != K:
        cols = jnp.pad(cols, ((0, 0), (0, Kp - K)))
    y = pallas_matmul_bias_act(cols, layer["w"], layer["b"], activation="relu6")
    return y[:B * Ho * Wo, :layer["n"]].reshape(B, Ho, Wo, layer["n"])


def pointwise_block(x, layer, activation, residual=None):
    """1x1 conv (+ folded BN + act), optionally with the residual add fused in."""
    B, H, W, Cin = x.shape
    M = B * H * W
    r = None if residual is None else residual.reshape(M, residual.shape[-1])
    y = pallas_matmul_bias_act(x.reshape(M, Cin), layer["w"], layer["b"],
                               activation=activation, residual=r)
    return y[:M, :layer["n"]].reshape(B, H, W, layer["n"])


def depthwise_block(x, layer, stride):
    """3x3 depthwise + folded BN + ReLU6.  Stride-2 layers compute the stride-1
    result and subsample (equivalent; avoids strided in-kernel slices)."""
    B, H, W, C = x.shape
    xp = jnp.pad(x.astype(jnp.bfloat16), ((0, 0), (1, 1), (1, 1), (0, 0)))
    Hp, Wp = H + 2, W + 2
    kernel = functools.partial(_dw3x3_kernel, Ho=H, Wo=W)
    y = pl.pallas_call(
        kernel,
        out_shape=jax.ShapeDtypeStruct((B, H, W, C), jnp.bfloat16),
        grid=(B,),
        in_specs=[
            pl.BlockSpec((None, Hp, Wp, C), lambda b: (b, 0, 0, 0)),
            pl.BlockSpec((9, 1, C), lambda b: (0, 0, 0)),
            pl.BlockSpec((1, C), lambda b: (0, 0)),
        ],
        out_specs=pl.BlockSpec((None, H, W, C), lambda b: (b, 0, 0, 0)),
        compiler_params=pltpu.CompilerParams(
            dimension_semantics=("parallel",),
            vmem_limit_bytes=_VMEM_LIMIT),
    )(xp, layer["w"], layer["b"])
    if stride == 2:
        y = y[:, ::2, ::2, :]
    return y


def pool_linear(x, layer):
    """AdaptiveAvgPool2d((1,1)) + Dropout(eval: identity) + Linear, one kernel."""
    # TODO(synk): nn.Dropout(0.2) is identity in eval mode; training-mode stochastic
    # masking is not replicated here.
    B, H, W, C = x.shape
    xr = x.reshape(B, H * W, C).astype(jnp.bfloat16)
    Np = layer["w"].shape[1]
    out = pl.pallas_call(
        _pool_linear_kernel,
        out_shape=jax.ShapeDtypeStruct((B, Np), jnp.float32),
        grid=(1,),
        in_specs=[
            pl.BlockSpec((B, H * W, C), lambda i: (0, 0, 0)),
            pl.BlockSpec((C, Np), lambda i: (0, 0)),
            pl.BlockSpec((1, Np), lambda i: (0, 0)),
        ],
        out_specs=pl.BlockSpec((B, Np), lambda i: (0, 0)),
        compiler_params=pltpu.CompilerParams(vmem_limit_bytes=_VMEM_LIMIT),
    )(xr, layer["w"], layer["b"])
    return out[:, :layer["n"]]


# ----------------------------- Parameters -----------------------------

MOBILENET_V2_CFG = [
    # (expand_ratio, out_channels, num_blocks, first_stride)
    (1, 16, 1, 1),
    (6, 24, 2, 2),
    (6, 32, 3, 2),
    (6, 64, 4, 2),
    (6, 96, 3, 1),
    (6, 160, 3, 2),
    (6, 320, 1, 1),
]


def _conv_w(key, shape, fan_in):
    return jax.random.normal(key, shape, jnp.float32) * (1.0 / jnp.sqrt(fan_in))


def init_params(key, output_dim=64):
    # TODO(synk): pretrained IMAGENET1K_V1 weights are not loadable here; weights are
    # deterministic synthetic values with the exact MobileNetV2 shapes.
    keys = iter(jax.random.split(key, 512))

    def nk():
        return next(keys)

    def bn(c):  # folded BatchNorm (eval mode): per-channel scale & bias
        return (jax.random.uniform(nk(), (c,), jnp.float32, 0.5, 1.5),
                jax.random.normal(nk(), (c,), jnp.float32) * 0.1)

    params = {}
    params["stem_w"] = _conv_w(nk(), (3, 3, 3, 32), 27)
    params["stem_s"], params["stem_b"] = bn(32)

    blocks = []
    in_c = 32
    for t, c, n, s in MOBILENET_V2_CFG:
        for i in range(n):
            stride = s if i == 0 else 1
            hidden = in_c * t
            blk = {"stride": stride, "expand": t}
            if t != 1:
                blk["exp_w"] = _conv_w(nk(), (in_c, hidden), in_c)
                blk["exp_s"], blk["exp_b"] = bn(hidden)
            blk["dw_w"] = _conv_w(nk(), (3, 3, hidden), 9)
            blk["dw_s"], blk["dw_b"] = bn(hidden)
            blk["pw_w"] = _conv_w(nk(), (hidden, c), hidden)
            blk["pw_s"], blk["pw_b"] = bn(c)
            blocks.append(blk)
            in_c = c
    params["blocks"] = blocks

    params["head_w"] = _conv_w(nk(), (in_c, 1280), in_c)
    params["head_s"], params["head_b"] = bn(1280)

    params["proj_w"] = _conv_w(nk(), (1280, output_dim), 1280)
    params["proj_b"] = jax.random.normal(nk(), (output_dim,), jnp.float32) * 0.01
    return params


# Host-side packing: fold BN scale into weights, cast to bf16, pad N to 128-multiple.

def _pack_matmul(w, scale, bias):
    K, N = w.shape
    Np = _round_up(N, 128)
    wf = jnp.pad(w * scale[None, :], ((0, 0), (0, Np - N))).astype(jnp.bfloat16)
    bf = jnp.pad(bias, (0, Np - N)).reshape(1, Np).astype(jnp.float32)
    return {"w": wf, "b": bf, "n": N}


def _pack_conv3x3(w, scale, bias):
    kh, kw, cin, cout = w.shape
    K = kh * kw * cin
    Kp = _round_up(K, 8)                       # stem K: 27 -> 32 (sublane aligned)
    Np = _round_up(cout, 128)
    wf = (w * scale[None, None, None, :]).reshape(K, cout)
    wf = jnp.pad(wf, ((0, Kp - K), (0, Np - cout))).astype(jnp.bfloat16)
    bf = jnp.pad(bias, (0, Np - cout)).reshape(1, Np).astype(jnp.float32)
    return {"w": wf, "b": bf, "n": cout}


def _pack_dw(w, scale, bias):
    C = w.shape[-1]
    wf = (w * scale[None, None, :]).reshape(9, 1, C).astype(jnp.bfloat16)
    bf = bias.reshape(1, C).astype(jnp.float32)
    return {"w": wf, "b": bf}


def pack_params(raw):
    packed = {"stem": _pack_conv3x3(raw["stem_w"], raw["stem_s"], raw["stem_b"])}
    blocks = []
    for blk in raw["blocks"]:
        pb = {"stride": blk["stride"], "expand": blk["expand"]}
        if blk["expand"] != 1:
            pb["exp"] = _pack_matmul(blk["exp_w"], blk["exp_s"], blk["exp_b"])
        pb["dw"] = _pack_dw(blk["dw_w"], blk["dw_s"], blk["dw_b"])
        pb["pw"] = _pack_matmul(blk["pw_w"], blk["pw_s"], blk["pw_b"])
        blocks.append(pb)
    packed["blocks"] = blocks
    packed["head"] = _pack_matmul(raw["head_w"], raw["head_s"], raw["head_b"])
    ones = jnp.ones((raw["proj_w"].shape[1],), jnp.float32)   # Linear: no BN scale
    packed["proj"] = _pack_matmul(raw["proj_w"], ones, raw["proj_b"])
    return packed


# ----------------------------- Forward (matches CNNExtractor.forward) -----------------------------

def cnn_extractor_forward(params, x_nchw):
    # PyTorch NCHW -> NHWC once at entry.
    x = jnp.transpose(x_nchw, (0, 2, 3, 1)).astype(jnp.float32)

    # MobileNetV2 features
    x = stem_conv(x, params["stem"])
    for blk in params["blocks"]:
        inp = x
        h = x
        if blk["expand"] != 1:
            h = pointwise_block(h, blk["exp"], "relu6")
        h = depthwise_block(h, blk["dw"], blk["stride"])
        use_res = (blk["stride"] == 1 and inp.shape[-1] == blk["pw"]["n"])
        h = pointwise_block(h, blk["pw"], "none",
                            residual=inp if use_res else None)  # fused skip add
        x = h
    x = pointwise_block(x, params["head"], "relu6")

    # pool(...).squeeze(-1).squeeze(-1) -> dropout (eval: identity) -> proj
    return pool_linear(x, params["proj"])     # (B, output_dim), f32


# ----------------------------- Main -----------------------------

if __name__ == "__main__":
    key = jax.random.PRNGKey(0)
    pkey, xkey = jax.random.split(key)
    raw = init_params(pkey, output_dim=64)
    params = pack_params(raw)

    # NCHW input like PyTorch; 32x32 is the smallest spatial size that survives
    # MobileNetV2's 32x downsampling (final feature map 1x1x1280).
    x = jax.random.normal(xkey, (2, 3, 32, 32), jnp.float32)

    out = cnn_extractor_forward(params, x)
    out = jax.block_until_ready(out)
    assert out.shape == (2, 64), out.shape
    assert bool(jnp.all(jnp.isfinite(out)))
    print("KERNEL_OK")
</pallas_src>

<mosaic_0001>
module attributes {stable_mosaic.version = 11 : i64} {
  func.func @_matmul_bias_act_kernel(%arg0: i32, %arg1: memref<256x32xbf16, #tpu.memory_space<vmem>>, %arg2: memref<32x128xbf16, #tpu.memory_space<vmem>>, %arg3: memref<1x128xf32, #tpu.memory_space<vmem>>, %arg4: memref<256x128xbf16, #tpu.memory_space<vmem>>) attributes {dimension_semantics = [#tpu.dimension_semantics<parallel>], iteration_bounds = array<i64: 2>, scalar_prefetch = 0 : i64, scratch_operands = 0 : i64, tpu.core_type = #tpu.core_type<tc>, window_params = [{transform_indices = @transform_0, window_bounds = array<i64: 256, 32>}, {pipeline_mode = #tpu.pipeline_mode<synchronous>, transform_indices = @transform_1, window_bounds = array<i64: 32, 128>}, {pipeline_mode = #tpu.pipeline_mode<synchronous>, transform_indices = @transform_2, window_bounds = array<i64: 1, 128>}, {transform_indices = @transform_3, window_bounds = array<i64: 256, 128>}]} {
    %c0 = arith.constant 0 : index
    %c0_0 = arith.constant 0 : index
    %0 = vector.load %arg1[%c0, %c0_0] : memref<256x32xbf16, #tpu.memory_space<vmem>>, vector<256x32xbf16>
    %c0_1 = arith.constant 0 : index
    %c0_2 = arith.constant 0 : index
    %1 = vector.load %arg2[%c0_1, %c0_2] : memref<32x128xbf16, #tpu.memory_space<vmem>>, vector<32x128xbf16>
    %cst = arith.constant dense<0.000000e+00> : vector<256x128xf32>
    %2 = tpu.matmul %0, %1, %cst {dimension_numbers = #tpu.dot_dimension_numbers<[1], [0], [0], [1], [0, 0, 1, 1], [], []>} : vector<256x32xbf16>, vector<32x128xbf16>, vector<256x128xf32> -> vector<256x128xf32>
    %c0_3 = arith.constant 0 : index
    %c0_4 = arith.constant 0 : index
    %3 = vector.load %arg3[%c0_3, %c0_4] : memref<1x128xf32, #tpu.memory_space<vmem>>, vector<1x128xf32>
    %4 = vector.broadcast %3 : vector<1x128xf32> to vector<256x128xf32>
    %5 = arith.addf %2, %4 : vector<256x128xf32>
    %cst_5 = arith.constant 0.000000e+00 : f32
    %cst_6 = arith.constant 6.000000e+00 : f32
    %6 = vector.broadcast %cst_5 : f32 to vector<256x128xf32>
    %7 = arith.maximumf %6, %5 : vector<256x128xf32>
    %8 = vector.broadcast %cst_6 : f32 to vector<256x128xf32>
    %9 = arith.minimumf %8, %7 : vector<256x128xf32>
    %10 = arith.truncf %9 : vector<256x128xf32> to vector<256x128xbf16>
    %c0_7 = arith.constant 0 : index
    %c0_8 = arith.constant 0 : index
    %11 = vector.load %arg4[%c0_7, %c0_8] : memref<256x128xbf16, #tpu.memory_space<vmem>>, vector<256x128xbf16>
    tpu.vector_store %arg4[%c0_7, %c0_8], %10 {strides = array<i32>} : memref<256x128xbf16, #tpu.memory_space<vmem>>, vector<256x128xbf16>,
    return
  }
  func.func @transform_0(%arg0: i32) -> (i32, i32) {
    %c0_i32 = arith.constant 0 : i32
    %c0_i32_0 = arith.constant 0 : i32
    return %arg0, %c0_i32 : i32, i32
  }
  func.func @transform_1(%arg0: i32) -> (i32, i32) {
    %c0_i32 = arith.constant 0 : i32
    %c0_i32_0 = arith.constant 0 : i32
    %c0_i32_1 = arith.constant 0 : i32
    return %c0_i32, %c0_i32_0 : i32, i32
  }
  func.func @transform_2(%arg0: i32) -> (i32, i32) {
    %c0_i32 = arith.constant 0 : i32
    %c0_i32_0 = arith.constant 0 : i32
    %c0_i32_1 = arith.constant 0 : i32
    return %c0_i32, %c0_i32_0 : i32, i32
  }
  func.func @transform_3(%arg0: i32) -> (i32, i32) {
    %c0_i32 = arith.constant 0 : i32
    %c0_i32_0 = arith.constant 0 : i32
    return %arg0, %c0_i32 : i32, i32
  }
}

</mosaic_0001>

<bundles_post_ra>
// kernel: tpu_custom_call.1
= control target key start
LH: loop header
LB: loop body
LE: loop exit
PB: predicated region body
PF: predicated region fallthrough
CT: control target
= control target key end

     0   :  { %8 = vsyncpa [#allocation3], 0  ;;  %s1431_s0 = inlined_call_operand.vmem [shape: bf16[512,32], index: 0, kind: input, shape index: {}]   ;;  %s1432_s1 = inlined_call_operand.vmem [shape: bf16[32,128], index: 1, kind: input, shape index: {}]   ;;  %s1433_s2 = inlined_call_operand.vmem [shape: f32[1,128], index: 2, kind: input, shape index: {}]   ;;  %s1434_s3 = inlined_call_operand.hbm [shape: bf16[512,128], index: 3, kind: output, shape index: {}]  }
   0x1   :  { %10 = vsyncpa [#allocation3 + $0x1], 0  ;;  %s1229_s12 = smov 0   ;;  %s1231_s13 = smov 0  }
   0x2   :  { %s1233_s14 = smov 0   ;;  %s1235_s15 = smov 0  }
   0x3 LB: > { %s1250_s16 = sadd.s32 4294967295, %s1204_s15   ;;  %s818_s17 = sadd.s32 4294967294, %s1204_s15   ;;  %s1204_s15 = sphi %s1235_s15, %s1440_s15   ;;  %s1200_s14 = sphi %s1233_s14, %s1439_s14   ;;  %s1196_s13 = sphi %s1231_s13, %s1438_s13   ;;  %s1192_s12 = sphi %s1229_s12, %s1437_s12  }
   0x4   : > { %s1254_s18 = sadd.s32 1, %s1204_s15   ;;  %s91_s19 = sadd.s32 1, %s1200_s14 }
   0x5   : > { %s88_s20 = ssub.s32 %s1204_s15, %s1254_s18  ;;  %p101_p0 = scmp.ne.s32.totalorder %s1200_s14, %s1196_s13 }
   0x6   : > { %p89_p1 = scmp.eq.s32.totalorder %s88_s20, 0  ;;  %p102_p2 = scmp.eq.s32.totalorder %s1250_s16, 1 }
   0x7   : > { %p107_p3 = scmp.ne.s32.totalorder %s1196_s13, %s1192_s12  ;;  %p108_p4 = scmp.eq.s32.totalorder %s818_s17, 1 }
   0x8   : > { %s1265_s21 = scalar_select %p89_p1, %s1200_s14, %s91_s19  }
   0x9   : > { %p1267_p5 = por %p102_p2, %p101_p0  ;;  %p1271_p6 = por %p108_p4, %p107_p3 }
   0xa   : > { %p821_p7 = scmp.ge.s32.totalorder %s1204_s15, 1  ;;  %p141_p8 = scmp.lt.s32.totalorder %s1204_s15, 3 }
   0xc   : > { %p142_p9 = pnand %p821_p7, %p141_p8 }
   0xd   : > { %v1124_v0 = vld [vmem:[%s1432_s1] sm:$0xff] (!%p142_p9)   ;;  %s823_s26 = sshll.u32 (!%p142_p9), %s1250_s16, 5  ;;  %v1125_v1 = vld [vmem:[%s1432_s1 + $0x8] sm:$0xff] (!%p142_p9)   ;;  %vm308_vm0 = vcmask (!%p142_p9), 261120   ;;  %s162_s8 = sand.u32 (!%p142_p9), 1, %s1196_s13  }
   0xe   : > { %145 = sbr.rel (%p142_p9) target bundleno = 289 (0x121), region = 32  ;;  %p166_p10 = scmp.lt.s32.totalorder (!%p142_p9), %s823_s26, 63  ;;  %1043 = vmatprep.subr.bf16.mxu0 (!%p142_p9), %v1124_v0  ;;  %1079 = vmatprep.subr.bf16.mxu1 (!%p142_p9), %v1124_v0  ;;  %v1324_v18 = vld [vmem:[%s1433_s2] ss:$0 sm:$0xff] (!%p142_p9) }
   0xf   : > { %1044 = vmatpush3.bf16.msra.mxu0 (!%p142_p9), %v1124_v0  ;;  %1081 = vmatpush3.bf16.msra.mxu1 (!%p142_p9), %v1124_v0  ;;  %s822_s9 = sshll.u32 (!%p142_p9), %s162_s8, 7  ;;  %s929_s11 = sshll.u32 (!%p142_p9), %s1250_s16, 11 }
  0x10   : > { %1045 = vmatprep.subr.bf16.mxu0 (!%p142_p9), %v1125_v1  ;;  %1080 = vmatprep.subr.bf16.mxu1 (!%p142_p9), %v1125_v1  ;;  %s1340_s10 = scalar_lea.vmem (!%p142_p9), [#allocation2], %s822_s9  ;;  %s1380_s24 = scalar_lea.hbm (!%p142_p9), %s1434_s3, %s929_s11 }
  0x11   : > { %s756_s17 = sshll.u32 (!%p142_p9), %s1340_s10, 4  ;;  %s1390_s16 = scalar_lea.sflag (!%p142_p9), [#allocation3], %s162_s8  ;;  %s1382_s17 = int_to_ptr.vmem [resolvable:$true] %s756_s17 }
  0x12   : > { %s1142_s25 = scalar_lea.vmem (!%p142_p9), %s1382_s17, 2048 }
  0x13   : > { %1046 = vmatpush3.bf16.msra.mxu0 (!%p142_p9), %v1125_v1  ;;  %1082 = vmatpush3.bf16.msra.mxu1 (!%p142_p9), %v1125_v1  ;;  %p1143_p11 = scmp.ne.s32.totalorder (!%p142_p9), %s1382_s17, %s1142_s25 }
  0x15   : > { %s1442_s26 = smov (!%p166_p10, %s823_s26), 63  ;;  %p1144_p12 = pnand %p1143_p11, %p1267_p5 }
  0x16   : > { %s824_s29 = sshll.u32 %s1442_s26, 2  ;;  %s1206_s26 = smov [#allocation2]  }
  0x17   : > { %s1287_s5 = scalar_lea.vmem %s1431_s0, %s824_s29  ;;  %p1145_p13 = pneg %p1144_p12 }
  0x18   : > { %v1126_v2 = vld [vmem:[%s1287_s5] sm:$0xff]   ;;  %v1128_v4 = vld [vmem:[%s1287_s5 + $0x8] sm:$0xff]   ;;  %v1130_v6 = vld [vmem:[%s1287_s5 + $0x10] sm:$0xff]   ;;  %s1146_s27 = sshll.u32 %s1206_s26, 4  ;;  %s1147_s27 = int_to_ptr.vmem [resolvable:$false] %s1146_s27 }
  0x19   : > { %v1127_v3 = vld [vmem:[%s1287_s5 + $0x40] sm:$0xff]   ;;  %1047 = vmatprep.mubr.msk.bf16.mxu0 %vm308_vm0, %v1126_v2  ;;  %v1129_v5 = vld [vmem:[%s1287_s5 + $0x48] sm:$0xff]   ;;  %v1131_v7 = vld [vmem:[%s1287_s5 + $0x50] sm:$0xff]   ;;  %s1148_s28 = scalar_lea.vmem %s1147_s27, 4096  ;;  %p1149_p0 = scmp.lt.s32.totalorder %s1382_s17, %s1147_s27 }
  0x1a   : > { %1063 = vmatprep.mubr.msk.bf16.mxu1 %vm308_vm0, %v1127_v3  ;;  %1048 = vmatmul.mubr.msk.bf16.vlgmr.msra.gmra.mrb[0].mxu0 %vm308_vm0, %v1128_v4  ;;  %v1132_v8 = vld [vmem:[%s1287_s5 + $0x18] sm:$0xff]   ;;  %v1134_v10 = vld [vmem:[%s1287_s5 + $0x20] sm:$0xff]   ;;  %v1136_v12 = vld [vmem:[%s1287_s5 + $0x28] sm:$0xff]   ;;  %p1150_p1 = scmp.lt.s32.totalorder %s1148_s28, %s1142_s25 }
  0x1b   : > { %1064 = vmatmul.mubr.msk.bf16.vlgmr.msra.gmra.mrb[0].mxu1 %vm308_vm0, %v1129_v5  ;;  %1051 = vmatprep.mubr.msk.bf16.mxu0 %vm308_vm0, %v1130_v6  ;;  %v1133_v9 = vld [vmem:[%s1287_s5 + $0x58] sm:$0xff]   ;;  %v1135_v11 = vld [vmem:[%s1287_s5 + $0x60] sm:$0xff]   ;;  %v1137_v13 = vld [vmem:[%s1287_s5 + $0x68] sm:$0xff]  }
  0x1c   : > { %1067 = vmatprep.mubr.msk.bf16.mxu1 %vm308_vm0, %v1131_v7  ;;  %v1138_v14 = vld [vmem:[%s1287_s5 + $0x30] sm:$0xff]   ;;  %v1140_v16 = vld [vmem:[%s1287_s5 + $0x38] sm:$0xff]   ;;  %p1151_p2 = por %p1150_p1, %p1149_p0 }
  0x1d   : > { %v1139_v15 = vld [vmem:[%s1287_s5 + $0x70] sm:$0xff]   ;;  %v1141_v17 = vld [vmem:[%s1287_s5 + $0x78] sm:$0xff]  }
  0x1e   : > { %p1152_p3 = pnand %p1151_p2, %p1145_p13 }
  0x22   : > { %1052 = vmatmul.mubr.msk.bf16.gmra.mrb[4].mxu0 %vm308_vm0, %v1132_v8 }
  0x23   : > { %1068 = vmatmul.mubr.msk.bf16.gmra.mrb[4].mxu1 %vm308_vm0, %v1133_v9  ;;  %1055 = vmatprep.mubr.msk.bf16.mxu0 %vm308_vm0, %v1134_v10 }
  0x24   : > { %1071 = vmatprep.mubr.msk.bf16.mxu1 %vm308_vm0, %v1135_v11 }
  0x2a   : > { %1056 = vmatmul.mubr.msk.bf16.gmra.mrb[8].mxu0 %vm308_vm0, %v1136_v12 }
  0x2b   : > { %1072 = vmatmul.mubr.msk.bf16.gmra.mrb[8].mxu1 %vm308_vm0, %v1137_v13  ;;  %1059 = vmatprep.mubr.msk.bf16.mxu0 %vm308_vm0, %v1138_v14 }
  0x2c   : > { %1075 = vmatprep.mubr.msk.bf16.mxu1 %vm308_vm0, %v1139_v15 }
  0x32   : > { %1060 = vmatmul.mubr.msk.bf16.gmra.mrb[12].mxu0 %vm308_vm0, %v1140_v16 }
  0x33   : > { %1076 = vmatmul.mubr.msk.bf16.gmra.mrb[12].mxu1 %vm308_vm0, %v1141_v17 }
  0xed   : > { %v1049_v19 = vpop.f32.mrb[0].mxu0 }
  0xee   : > { %v400_v20 = vadd.f32 %v1049_v19, %v1324_v18  ;;  %v1065_v21 = vpop.f32.mrb[0].mxu1  ;;  %v391_v22 = vpop.f32.mrb[1].mxu0 }
  0xef   : > { %v464_v23 = vadd.f32 %v1065_v21, %v1324_v18  ;;  %v392_v24 = vadd.f32 %v1324_v18, %v391_v22  ;;  %v455_v25 = vpop.f32.mrb[1].mxu1  ;;  %v1050_v26 = vpop.f32.mrb[2].mxu0 }
  0xf0   : > { %v520_v27 = vmax.f32 %v400_v20, 0.0  ;;  %v456_v28 = vadd.f32 %v1324_v18, %v455_v25  ;;  %v403_v29 = vadd.f32 %v1050_v26, %v1324_v18  ;;  %v1066_v30 = vpop.f32.mrb[2].mxu1  ;;  %v394_v31 = vpop.f32.mrb[3].mxu0 }
  0xf1   : > { %v536_v32 = vmax.f32 %v464_v23, 0.0  ;;  %v518_v33 = vmax.f32 %v392_v24, 0.0  ;;  %v467_v34 = vadd.f32 %v1066_v30, %v1324_v18  ;;  %v395_v35 = vadd.f32 %v1324_v18, %v394_v31  ;;  %v458_v36 = vpop.f32.mrb[3].mxu1 }
  0xf2   : > { %v534_v37 = vmax.f32 %v456_v28, 0.0  ;;  %v521_v38 = vmax.f32 %v403_v29, 0.0  ;;  %v459_v39 = vadd.f32 %v1324_v18, %v458_v36  ;;  %v552_v42 = vmin.f32 %v520_v27, 6.0 }
  0xf3   : > { %v537_v40 = vmax.f32 %v467_v34, 0.0  ;;  %v519_v41 = vmax.f32 %v395_v35, 0.0  ;;  %v568_v45 = vmin.f32 %v536_v32, 6.0  ;;  %v550_v46 = vmin.f32 %v518_v33, 6.0 }
  0xf4   : > { %v553_v43 = vmin.f32 %v521_v38, 6.0  ;;  %v535_v44 = vmax.f32 %v459_v39, 0.0  ;;  %v566_v50 = vmin.f32 %v534_v37, 6.0 }
  0xf5   : > { %v569_v47 = vmin.f32 %v537_v40, 6.0  ;;  %v551_v48 = vmin.f32 %v519_v41, 6.0  ;;  %v1053_v49 = vpop.f32.mrb[4].mxu0 }
  0xf6   : > { %v938_v51 = vpack.c.bf16 %v553_v43, %v552_v42  ;;  %v567_v52 = vmin.f32 %v535_v44, 6.0  ;;  %v416_v53 = vadd.f32 %v1053_v49, %v1324_v18  ;;  %v1069_v54 = vpop.f32.mrb[4].mxu1  ;;  %v407_v55 = vpop.f32.mrb[5].mxu0 }
  0xf7   : > { %v978_v56 = vpack.c.bf16 %v569_v47, %v568_v45  ;;  %v933_v57 = vpack.c.bf16 %v551_v48, %v550_v46  ;;  %v480_v58 = vadd.f32 %v1069_v54, %v1324_v18  ;;  %v408_v59 = vadd.f32 %v1324_v18, %v407_v55  ;;  %v471_v60 = vpop.f32.mrb[5].mxu1  ;;  %v1054_v61 = vpop.f32.mrb[6].mxu0 }
  0xf8   : > { %1010 = vst [vmem:[%s1340_s10 + $0x8] sm:$0xff] %v938_v51   ;;  %v973_v62 = vpack.c.bf16 %v567_v52, %v566_v50  ;;  %v524_v63 = vmax.f32 %v416_v53, 0.0  ;;  %v472_v0 = vadd.f32 %v1324_v18, %v471_v60  ;;  %v419_v1 = vadd.f32 %v1054_v61, %v1324_v18  ;;  %v1070_v2 = vpop.f32.mrb[6].mxu1  ;;  %v410_v3 = vpop.f32.mrb[7].mxu0 }
  0xf9   : > { %1018 = vst [vmem:[%s1340_s10 + $0x48] sm:$0xff] %v978_v56   ;;  %934 = vst [vmem:[%s1340_s10] sm:$0xff] %v933_v57   ;;  %v540_v4 = vmax.f32 %v480_v58, 0.0  ;;  %v522_v5 = vmax.f32 %v408_v59, 0.0  ;;  %v483_v6 = vadd.f32 %v1070_v2, %v1324_v18  ;;  %v411_v7 = vadd.f32 %v1324_v18, %v410_v3  ;;  %v474_v8 = vpop.f32.mrb[7].mxu1 }
  0xfa   : > { %1017 = vst [vmem:[%s1340_s10 + $0x40] sm:$0xff] %v973_v62   ;;  %v538_v9 = vmax.f32 %v472_v0, 0.0  ;;  %v525_v10 = vmax.f32 %v419_v1, 0.0  ;;  %v475_v11 = vadd.f32 %v1324_v18, %v474_v8  ;;  %v556_v14 = vmin.f32 %v524_v63, 6.0 }
  0xfb   : > { %v541_v12 = vmax.f32 %v483_v6, 0.0  ;;  %v523_v13 = vmax.f32 %v411_v7, 0.0  ;;  %v572_v17 = vmin.f32 %v540_v4, 6.0  ;;  %v554_v19 = vmin.f32 %v522_v5, 6.0 }
  0xfc   : > { %v557_v15 = vmin.f32 %v525_v10, 6.0  ;;  %v539_v16 = vmax.f32 %v475_v11, 0.0  ;;  %v570_v23 = vmin.f32 %v538_v9, 6.0 }
  0xfd   : > { %v573_v20 = vmin.f32 %v541_v12, 6.0  ;;  %v555_v21 = vmin.f32 %v523_v13, 6.0  ;;  %v1057_v22 = vpop.f32.mrb[8].mxu0 }
  0xfe   : > { %v948_v24 = vpack.c.bf16 %v557_v15, %v556_v14  ;;  %v571_v25 = vmin.f32 %v539_v16, 6.0  ;;  %v432_v26 = vadd.f32 %v1057_v22, %v1324_v18  ;;  %v1073_v27 = vpop.f32.mrb[8].mxu1  ;;  %v423_v28 = vpop.f32.mrb[9].mxu0 }
  0xff   : > { %v988_v29 = vpack.c.bf16 %v573_v20, %v572_v17  ;;  %v943_v30 = vpack.c.bf16 %v555_v21, %v554_v19  ;;  %v496_v31 = vadd.f32 %v1073_v27, %v1324_v18  ;;  %v424_v32 = vadd.f32 %v1324_v18, %v423_v28  ;;  %v487_v33 = vpop.f32.mrb[9].mxu1  ;;  %v1058_v34 = vpop.f32.mrb[10].mxu0 }
 0x100   : > { %1012 = vst [vmem:[%s1340_s10 + $0x18] sm:$0xff] %v948_v24   ;;  %v983_v35 = vpack.c.bf16 %v571_v25, %v570_v23  ;;  %v528_v36 = vmax.f32 %v432_v26, 0.0  ;;  %v488_v37 = vadd.f32 %v1324_v18, %v487_v33  ;;  %v435_v38 = vadd.f32 %v1058_v34, %v1324_v18  ;;  %v1074_v39 = vpop.f32.mrb[10].mxu1  ;;  %v426_v40 = vpop.f32.mrb[11].mxu0 }
 0x101   : > { %1020 = vst [vmem:[%s1340_s10 + $0x58] sm:$0xff] %v988_v29   ;;  %1011 = vst [vmem:[%s1340_s10 + $0x10] sm:$0xff] %v943_v30   ;;  %v544_v41 = vmax.f32 %v496_v31, 0.0  ;;  %v526_v42 = vmax.f32 %v424_v32, 0.0  ;;  %v499_v43 = vadd.f32 %v1074_v39, %v1324_v18  ;;  %v427_v44 = vadd.f32 %v1324_v18, %v426_v40  ;;  %v490_v45 = vpop.f32.mrb[11].mxu1 }
 0x102   : > { %1019 = vst [vmem:[%s1340_s10 + $0x50] sm:$0xff] %v983_v35   ;;  %v542_v46 = vmax.f32 %v488_v37, 0.0  ;;  %v529_v47 = vmax.f32 %v435_v38, 0.0  ;;  %v491_v48 = vadd.f32 %v1324_v18, %v490_v45  ;;  %v560_v51 = vmin.f32 %v528_v36, 6.0 }
 0x103   : > { %v545_v49 = vmax.f32 %v499_v43, 0.0  ;;  %v527_v50 = vmax.f32 %v427_v44, 0.0  ;;  %v576_v54 = vmin.f32 %v544_v41, 6.0  ;;  %v558_v55 = vmin.f32 %v526_v42, 6.0 }
 0x104   : > { %v561_v52 = vmin.f32 %v529_v47, 6.0  ;;  %v543_v53 = vmax.f32 %v491_v48, 0.0  ;;  %v574_v59 = vmin.f32 %v542_v46, 6.0 }
 0x105   : > { %v577_v56 = vmin.f32 %v545_v49, 6.0  ;;  %v559_v57 = vmin.f32 %v527_v50, 6.0  ;;  %v1061_v58 = vpop.f32.mrb[12].mxu0 }
 0x106   : > { %v958_v60 = vpack.c.bf16 %v561_v52, %v560_v51  ;;  %v575_v61 = vmin.f32 %v543_v53, 6.0  ;;  %v448_v62 = vadd.f32 %v1061_v58, %v1324_v18  ;;  %v1077_v63 = vpop.f32.mrb[12].mxu1  ;;  %v439_v0 = vpop.f32.mrb[13].mxu0 }
 0x107   : > { %v998_v1 = vpack.c.bf16 %v577_v56, %v576_v54  ;;  %v953_v2 = vpack.c.bf16 %v559_v57, %v558_v55  ;;  %v512_v3 = vadd.f32 %v1077_v63, %v1324_v18  ;;  %v440_v4 = vadd.f32 %v1324_v18, %v439_v0  ;;  %v503_v5 = vpop.f32.mrb[13].mxu1  ;;  %v1062_v6 = vpop.f32.mrb[14].mxu0 }
 0x108   : > { %1014 = vst [vmem:[%s1340_s10 + $0x28] sm:$0xff] %v958_v60   ;;  %v993_v7 = vpack.c.bf16 %v575_v61, %v574_v59  ;;  %v532_v8 = vmax.f32 %v448_v62, 0.0  ;;  %v504_v9 = vadd.f32 %v1324_v18, %v503_v5  ;;  %v451_v10 = vadd.f32 %v1062_v6, %v1324_v18  ;;  %v1078_v11 = vpop.f32.mrb[14].mxu1  ;;  %v442_v12 = vpop.f32.mrb[15].mxu0 }
 0x109   : > { %1022 = vst [vmem:[%s1340_s10 + $0x68] sm:$0xff] %v998_v1   ;;  %1013 = vst [vmem:[%s1340_s10 + $0x20] sm:$0xff] %v953_v2   ;;  %v548_v13 = vmax.f32 %v512_v3, 0.0  ;;  %v530_v14 = vmax.f32 %v440_v4, 0.0  ;;  %v515_v15 = vadd.f32 %v1078_v11, %v1324_v18  ;;  %v443_v16 = vadd.f32 %v1324_v18, %v442_v12  ;;  %v506_v17 = vpop.f32.mrb[15].mxu1 }
 0x10a   : > { %1021 = vst [vmem:[%s1340_s10 + $0x60] sm:$0xff] %v993_v7   ;;  %v546_v19 = vmax.f32 %v504_v9, 0.0  ;;  %v533_v20 = vmax.f32 %v451_v10, 0.0  ;;  %v507_v21 = vadd.f32 %v1324_v18, %v506_v17  ;;  %v564_v24 = vmin.f32 %v532_v8, 6.0 }
 0x10b   : > { %v549_v22 = vmax.f32 %v515_v15, 0.0  ;;  %v531_v23 = vmax.f32 %v443_v16, 0.0  ;;  %v580_v27 = vmin.f32 %v548_v13, 6.0  ;;  %v562_v28 = vmin.f32 %v530_v14, 6.0 }
 0x10c   : > { %v565_v25 = vmin.f32 %v533_v20, 6.0  ;;  %v547_v26 = vmax.f32 %v507_v21, 0.0  ;;  %v578_v31 = vmin.f32 %v546_v19, 6.0 }
 0x10d   : > { %v581_v29 = vmin.f32 %v549_v22, 6.0  ;;  %v563_v30 = vmin.f32 %v531_v23, 6.0 }
 0x10e   : > { %v968_v32 = vpack.c.bf16 %v565_v25, %v564_v24  ;;  %v579_v18 = vmin.f32 %v547_v26, 6.0 }
 0x10f   : > { %v1008_v33 = vpack.c.bf16 %v581_v29, %v580_v27  ;;  %v963_v34 = vpack.c.bf16 %v563_v30, %v562_v28 }
 0x110   : > { %1016 = vst [vmem:[%s1340_s10 + $0x38] sm:$0xff] %v968_v32   ;;  %v1003_v35 = vpack.c.bf16 %v579_v18, %v578_v31 }
 0x111   : > { %1024 = vst [vmem:[%s1340_s10 + $0x78] sm:$0xff] %v1008_v33   ;;  %1015 = vst [vmem:[%s1340_s10 + $0x30] sm:$0xff] %v963_v34  }
 0x112   : > { %1023 = vst [vmem:[%s1340_s10 + $0x70] sm:$0xff] %v1003_v35  }
 0x113   : > { %1155 = shalt.err (!%p1152_p3)
}
 0x114   : > { %s1156_s29 = scalar_lea.hbm %s1380_s24, 2048  ;;  %s1160_s5 = scalar_lea.hbm %s1434_s3, 4096 }
 0x115   : > { %p1157_p4 = scmp.ne.s32.totalorder %s1380_s24, %s1156_s29  ;;  %p1161_p9 = scmp.lt.u32.totalorder %s1380_s24, %s1434_s3 }
 0x116   : > { %p1162_p10 = scmp.lt.u32.totalorder %s1160_s5, %s1156_s29  ;;  %p1164_p12 = scmp.lt.u32.totalorder %s1156_s29, %s1380_s24 }
 0x117   : > { %p1158_p7 = pnand %p1157_p4, %p1267_p5 }
 0x118   : > { %p1163_p11 = por %p1162_p10, %p1161_p9 }
 0x119   : > { %p1159_p8 = pneg %p1158_p7 }
 0x11a   : > { %p1165_p13 = por %p1164_p12, %p1163_p11 }
 0x11c   : > { %p1166_p0 = pnand %p1165_p13, %p1159_p8 }
 0x11e   : > { %1169 = shalt.err (!%p1166_p0)
}
 0x11f   : > { %s1207_s8 = smov 64   ;;  %s1208_s9 = smov 4  }
 0x120   : > { %1083 = dma.vmem_to_hbm [thread:$0]  (%p1267_p5), %s1382_s17, 2048, %s1380_s24, %s1390_s16, %s1207_s8, %s1207_s8, %s1208_s9  }
 0x121 PF: > { %p1089_p1 = scmp.ge.s32.totalorder %s1204_s15, 2  ;;  %s771_s10 = sand.u32 1, %s1192_s12  }
 0x122   : > { %s772_s11 = scalar_lea.sflag [#allocation3], %s771_s10 }
 0x123   : > { %p1086_p2 = pnand %p1089_p1, %p1271_p6 }
 0x125   : > { %1187 = dma.done.wait (!%p1086_p2), %s772_s11, 2048  }
 0x126   : > { %1189 = vsyncadd (!%p1086_p2), %s772_s11, 4294965248  ;;  %p13_p3 = scmp.ge.s32.totalorder %s1254_s18, 4   ;;  %s1437_s12 = smov %s1196_s13 }
 0x127   : > { %s1438_s13 = smov %s1200_s14  ;;  %s1439_s14 = smov %s1265_s21 }
 0x128   : > { %s1440_s15 = smov %s1254_s18  ;;  %15 = sbr.rel (!%p13_p3) target bundleno = 3 (0x3), region = 67 }
 0x12f   :  { %777 = vsyncpa [#allocation3], 1 }
 0x130   :  { %779 = vsyncpa [#allocation3 + $0x1], 1 }

</bundles_post_ra>
